<compile_context>
chip_gen: v7x
topology: tpu7x:2x2x1
jax: 0.10.0
libtpu: 0.0.40
codegen_flags: <defaults>
</compile_context>

<pallas_src>
import functools

import jax
import jax.numpy as jnp
from jax.experimental import pallas as pl
from jax.experimental.pallas import tpu as pltpu


def _round_up(x, m):
    return ((x + m - 1) // m) * m


def _ffn_ln_kernel(x_ref, w1_ref, w2_ref, g_ref, b_ref, o_ref, acc_ref, *, eps):
    """One (row-tile i, d_ff-tile k) grid step.

    x_ref  : [tm, d_model]      (same block for every k -> stays resident)
    w1_ref : [d_model, tk_ff]   (k-th column block of W1)
    w2_ref : [tk_ff, d_model]   (k-th row block of W2)
    acc_ref: [tm, d_model] f32  VMEM accumulator, persistent across k
    """
    k = pl.program_id(1)

    @pl.when(k == 0)
    def _init():
        acc_ref[...] = jnp.zeros_like(acc_ref)

    # relu(x @ W1[:, k]) @ W2[k, :].  ReLU is elementwise, so applying it per
    # d_ff block is exact.  Matmul inputs keep their storage dtype; the MXU
    # accumulates in f32.
    h = jnp.dot(x_ref[...], w1_ref[...], preferred_element_type=jnp.float32)
    h = jnp.maximum(h, 0.0)
    acc_ref[...] += jnp.dot(h.astype(w2_ref.dtype), w2_ref[...],
                            preferred_element_type=jnp.float32)

    @pl.when(k == pl.num_programs(1) - 1)
    def _finalize():
        # Residual add + LayerNorm in f32 (biased variance == torch.nn.LayerNorm).
        z = acc_ref[...] + x_ref[...].astype(jnp.float32)
        mean = jnp.mean(z, axis=-1, keepdims=True)
        zc = z - mean
        var = jnp.mean(zc * zc, axis=-1, keepdims=True)
        zn = zc * jax.lax.rsqrt(var + eps)
        out = zn * g_ref[...].astype(jnp.float32) + b_ref[...].astype(jnp.float32)
        o_ref[...] = out.astype(o_ref.dtype)


def poswise_ffn(inputs, w1, w2, gamma, beta, *, eps=1e-5, tm=None, tk_ff=None):
    """inputs: [B, S, d_model]; w1: [d_model, d_ff]; w2: [d_ff, d_model]."""
    B, S, d_model = inputs.shape
    d_ff = w1.shape[1]
    M = B * S

    is_bf16 = inputs.dtype == jnp.bfloat16
    sub = 16 if is_bf16 else 8            # sublane granularity for the dtype

    # Row tile: big enough to amortize per-step overhead, small enough to keep
    # many row-grid steps (DMA pipelining + megacore sharding on "parallel").
    if tm is None:
        tm = 512 if is_bf16 else 256
    assert tm % sub == 0, f"tm must be a multiple of {sub} for dtype {inputs.dtype}"
    tm = min(tm, _round_up(M, sub))

    # d_ff tile: bounds VMEM independently of d_ff; must be lane-aligned (128).
    if tk_ff is None:
        tk_ff = min(512, _round_up(d_ff, 128))
    assert tk_ff % 128 == 0, "tk_ff must be a multiple of 128"
    tk_ff = min(tk_ff, _round_up(d_ff, 128))

    M_pad = _round_up(M, tm)
    d_ff_pad = _round_up(d_ff, tk_ff)

    x2d = inputs.reshape(M, d_model)
    if M_pad != M:
        x2d = jnp.pad(x2d, ((0, M_pad - M), (0, 0)))
    w1p, w2p = w1, w2
    if d_ff_pad != d_ff:
        w1p = jnp.pad(w1, ((0, 0), (0, d_ff_pad - d_ff)))
        w2p = jnp.pad(w2, ((0, d_ff_pad - d_ff), (0, 0)))

    gamma2 = gamma.reshape(1, d_model)
    beta2 = beta.reshape(1, d_model)

    grid = (M_pad // tm, d_ff_pad // tk_ff)

    bytes_accessed = (
        x2d.size * x2d.dtype.itemsize
        + w1p.size * w1p.dtype.itemsize
        + w2p.size * w2p.dtype.itemsize
        + M_pad * d_model * x2d.dtype.itemsize)
    cost = pl.CostEstimate(
        flops=4 * M_pad * d_ff_pad * d_model,   # two matmuls
        transcendentals=M_pad,                  # one rsqrt per row
        bytes_accessed=bytes_accessed)

    out2d = pl.pallas_call(
        functools.partial(_ffn_ln_kernel, eps=eps),
        out_shape=jax.ShapeDtypeStruct((M_pad, d_model), inputs.dtype),
        grid_spec=pltpu.PrefetchScalarGridSpec(
            num_scalar_prefetch=0,
            grid=grid,
            in_specs=[
                pl.BlockSpec((tm, d_model), lambda i, k: (i, 0)),      # x rows
                pl.BlockSpec((d_model, tk_ff), lambda i, k: (0, k)),   # W1 col block
                pl.BlockSpec((tk_ff, d_model), lambda i, k: (k, 0)),   # W2 row block
                pl.BlockSpec((1, d_model), lambda i, k: (0, 0)),       # gamma
                pl.BlockSpec((1, d_model), lambda i, k: (0, 0)),       # beta
            ],
            out_specs=pl.BlockSpec((tm, d_model), lambda i, k: (i, 0)),
            scratch_shapes=[pltpu.VMEM((tm, d_model), jnp.float32)],
        ),
        compiler_params=pltpu.CompilerParams(
            dimension_semantics=("parallel", "arbitrary")),
        cost_estimate=cost,
    )(x2d, w1p, w2p, gamma2, beta2)

    return out2d[:M].reshape(B, S, d_model)


def _reference(inputs, w1, w2, gamma, beta, eps=1e-5):
    x = inputs.astype(jnp.float32)
    y = jnp.maximum(x @ w1.astype(jnp.float32), 0.0) @ w2.astype(jnp.float32)
    z = y + x
    mean = jnp.mean(z, axis=-1, keepdims=True)
    var = jnp.mean((z - mean) ** 2, axis=-1, keepdims=True)
    return ((z - mean) * jax.lax.rsqrt(var + eps)) * gamma + beta


if __name__ == "__main__":
    # Small shapes consistent with the module's forward: [batch, seq, d_model].
    # Chosen so the tiny demo still exercises a multi-step row grid, the d_ff
    # reduction axis, and the row-padding path (M = 40 -> padded to 48).
    B, S, d_model, d_ff = 2, 20, 128, 512

    key = jax.random.PRNGKey(0)
    kx, k1, k2 = jax.random.split(key, 3)

    x = jax.random.normal(kx, (B, S, d_model), dtype=jnp.float32)
    # Linear weights (bias=False), stored as [in, out] for lane-dense matmuls.
    w1 = jax.random.normal(k1, (d_model, d_ff), dtype=jnp.float32) * (d_model ** -0.5)
    w2 = jax.random.normal(k2, (d_ff, d_model), dtype=jnp.float32) * (d_ff ** -0.5)
    # LayerNorm params: PyTorch default init (ones / zeros).
    gamma = jnp.ones((d_model,), dtype=jnp.float32)
    beta = jnp.zeros((d_model,), dtype=jnp.float32)

    out = poswise_ffn(x, w1, w2, gamma, beta, tm=16, tk_ff=128)
    out = jax.block_until_ready(out)

    ref = _reference(x, w1, w2, gamma, beta)
    assert out.shape == (B, S, d_model)
    assert jnp.allclose(out, ref, atol=1e-4, rtol=1e-4), float(
        jnp.max(jnp.abs(out - ref)))
    print("KERNEL_OK")
</pallas_src>

<mosaic_0001>
module attributes {stable_mosaic.version = 11 : i64} {
  func.func @_ffn_ln_kernel(%arg0: i32, %arg1: i32, %arg2: memref<16x128xf32, #tpu.memory_space<vmem>>, %arg3: memref<128x128xf32, #tpu.memory_space<vmem>>, %arg4: memref<128x128xf32, #tpu.memory_space<vmem>>, %arg5: memref<1x128xf32, #tpu.memory_space<vmem>>, %arg6: memref<1x128xf32, #tpu.memory_space<vmem>>, %arg7: memref<16x128xf32, #tpu.memory_space<vmem>>, %arg8: memref<16x128xf32, #tpu.memory_space<vmem>>) attributes {dimension_semantics = [#tpu.dimension_semantics<parallel>, #tpu.dimension_semantics<arbitrary>], iteration_bounds = array<i64: 3, 4>, scalar_prefetch = 0 : i64, scratch_operands = 1 : i64, tpu.core_type = #tpu.core_type<tc>, window_params = [{transform_indices = @transform_0, window_bounds = array<i64: 16, 128>}, {transform_indices = @transform_1, window_bounds = array<i64: 128, 128>}, {transform_indices = @transform_2, window_bounds = array<i64: 128, 128>}, {pipeline_mode = #tpu.pipeline_mode<synchronous>, transform_indices = @transform_3, window_bounds = array<i64: 1, 128>}, {pipeline_mode = #tpu.pipeline_mode<synchronous>, transform_indices = @transform_4, window_bounds = array<i64: 1, 128>}, {transform_indices = @transform_5, window_bounds = array<i64: 16, 128>}]} {
    %c0_i32 = arith.constant 0 : i32
    %0 = arith.cmpi eq, %arg1, %c0_i32 : i32
    %1 = arith.extui %0 : i1 to i32
    %c0_i32_0 = arith.constant 0 : i32
    %2 = arith.cmpi ne, %1, %c0_i32_0 : i32
    scf.if %2 {
      %cst_13 = arith.constant 0.000000e+00 : f32
      %16 = vector.broadcast %cst_13 : f32 to vector<16x128xf32>
      %c0_14 = arith.constant 0 : index
      %c0_15 = arith.constant 0 : index
      %17 = vector.load %arg8[%c0_14, %c0_15] : memref<16x128xf32, #tpu.memory_space<vmem>>, vector<16x128xf32>
      tpu.vector_store %arg8[%c0_14, %c0_15], %16 {strides = array<i32>} : memref<16x128xf32, #tpu.memory_space<vmem>>, vector<16x128xf32>,
    } else {
    }
    %c0 = arith.constant 0 : index
    %c0_1 = arith.constant 0 : index
    %3 = vector.load %arg2[%c0, %c0_1] : memref<16x128xf32, #tpu.memory_space<vmem>>, vector<16x128xf32>
    %c0_2 = arith.constant 0 : index
    %c0_3 = arith.constant 0 : index
    %4 = vector.load %arg3[%c0_2, %c0_3] : memref<128x128xf32, #tpu.memory_space<vmem>>, vector<128x128xf32>
    %cst = arith.constant dense<0.000000e+00> : vector<16x128xf32>
    %5 = tpu.matmul %3, %4, %cst {dimension_numbers = #tpu.dot_dimension_numbers<[1], [0], [0], [1], [0, 0, 1, 1], [], []>} : vector<16x128xf32>, vector<128x128xf32>, vector<16x128xf32> -> vector<16x128xf32>
    %cst_4 = arith.constant 0.000000e+00 : f32
    %6 = vector.broadcast %cst_4 : f32 to vector<16x128xf32>
    %7 = arith.maximumf %5, %6 : vector<16x128xf32>
    %c0_5 = arith.constant 0 : index
    %c0_6 = arith.constant 0 : index
    %8 = vector.load %arg8[%c0_5, %c0_6] : memref<16x128xf32, #tpu.memory_space<vmem>>, vector<16x128xf32>
    %c0_7 = arith.constant 0 : index
    %c0_8 = arith.constant 0 : index
    %9 = vector.load %arg4[%c0_7, %c0_8] : memref<128x128xf32, #tpu.memory_space<vmem>>, vector<128x128xf32>
    %cst_9 = arith.constant dense<0.000000e+00> : vector<16x128xf32>
    %10 = tpu.matmul %7, %9, %cst_9 {dimension_numbers = #tpu.dot_dimension_numbers<[1], [0], [0], [1], [0, 0, 1, 1], [], []>} : vector<16x128xf32>, vector<128x128xf32>, vector<16x128xf32> -> vector<16x128xf32>
    %11 = arith.addf %8, %10 : vector<16x128xf32>
    %c0_10 = arith.constant 0 : index
    %c0_11 = arith.constant 0 : index
    %12 = vector.load %arg8[%c0_10, %c0_11] : memref<16x128xf32, #tpu.memory_space<vmem>>, vector<16x128xf32>
    tpu.vector_store %arg8[%c0_10, %c0_11], %11 {strides = array<i32>} : memref<16x128xf32, #tpu.memory_space<vmem>>, vector<16x128xf32>,
    %c3_i32 = arith.constant 3 : i32
    %13 = arith.cmpi eq, %arg1, %c3_i32 : i32
    %14 = arith.extui %13 : i1 to i32
    %c0_i32_12 = arith.constant 0 : i32
    %15 = arith.cmpi ne, %14, %c0_i32_12 : i32
    scf.if %15 {
      %c0_13 = arith.constant 0 : index
      %c0_14 = arith.constant 0 : index
      %16 = vector.load %arg8[%c0_13, %c0_14] : memref<16x128xf32, #tpu.memory_space<vmem>>, vector<16x128xf32>
      %c0_15 = arith.constant 0 : index
      %c0_16 = arith.constant 0 : index
      %17 = vector.load %arg2[%c0_15, %c0_16] : memref<16x128xf32, #tpu.memory_space<vmem>>, vector<16x128xf32>
      %18 = arith.addf %16, %17 : vector<16x128xf32>
      %cst_17 = arith.constant dense<0.000000e+00> : vector<16xf32>
      %19 = vector.multi_reduction <add>, %18, %cst_17 [1] : vector<16x128xf32> to vector<16xf32>
      %20 = vector.shape_cast %19 : vector<16xf32> to vector<16x1xf32>
      %cst_18 = arith.constant 1.280000e+02 : f32
      %21 = vector.broadcast %cst_18 : f32 to vector<16x1xf32>
      %22 = arith.divf %20, %21 : vector<16x1xf32>
      %23 = vector.broadcast %22 : vector<16x1xf32> to vector<16x128xf32>
      %24 = arith.subf %18, %23 : vector<16x128xf32>
      %25 = arith.mulf %24, %24 : vector<16x128xf32>
      %cst_19 = arith.constant dense<0.000000e+00> : vector<16xf32>
      %26 = vector.multi_reduction <add>, %25, %cst_19 [1] : vector<16x128xf32> to vector<16xf32>
      %27 = vector.shape_cast %26 : vector<16xf32> to vector<16x1xf32>
      %cst_20 = arith.constant 1.280000e+02 : f32
      %28 = vector.broadcast %cst_20 : f32 to vector<16x1xf32>
      %29 = arith.divf %27, %28 : vector<16x1xf32>
      %cst_21 = arith.constant 9.99999974E-6 : f32
      %30 = vector.broadcast %cst_21 : f32 to vector<16x1xf32>
      %31 = arith.addf %29, %30 : vector<16x1xf32>
      %32 = math.rsqrt %31 : vector<16x1xf32>
      %33 = vector.broadcast %32 : vector<16x1xf32> to vector<16x128xf32>
      %34 = arith.mulf %24, %33 : vector<16x128xf32>
      %c0_22 = arith.constant 0 : index
      %c0_23 = arith.constant 0 : index
      %35 = vector.load %arg5[%c0_22, %c0_23] : memref<1x128xf32, #tpu.memory_space<vmem>>, vector<1x128xf32>
      %36 = vector.broadcast %35 : vector<1x128xf32> to vector<16x128xf32>
      %37 = arith.mulf %34, %36 : vector<16x128xf32>
      %c0_24 = arith.constant 0 : index
      %c0_25 = arith.constant 0 : index
      %38 = vector.load %arg6[%c0_24, %c0_25] : memref<1x128xf32, #tpu.memory_space<vmem>>, vector<1x128xf32>
      %39 = vector.broadcast %38 : vector<1x128xf32> to vector<16x128xf32>
      %40 = arith.addf %37, %39 : vector<16x128xf32>
      %c0_26 = arith.constant 0 : index
      %c0_27 = arith.constant 0 : index
      %41 = vector.load %arg7[%c0_26, %c0_27] : memref<16x128xf32, #tpu.memory_space<vmem>>, vector<16x128xf32>
      tpu.vector_store %arg7[%c0_26, %c0_27], %40 {strides = array<i32>} : memref<16x128xf32, #tpu.memory_space<vmem>>, vector<16x128xf32>,
    } else {
    }
    return
  }
  func.func @transform_0(%arg0: i32, %arg1: i32) -> (i32, i32) {
    %c0_i32 = arith.constant 0 : i32
    %c0_i32_0 = arith.constant 0 : i32
    return %arg0, %c0_i32 : i32, i32
  }
  func.func @transform_1(%arg0: i32, %arg1: i32) -> (i32, i32) {
    %c0_i32 = arith.constant 0 : i32
    %c0_i32_0 = arith.constant 0 : i32
    return %c0_i32, %arg1 : i32, i32
  }
  func.func @transform_2(%arg0: i32, %arg1: i32) -> (i32, i32) {
    %c0_i32 = arith.constant 0 : i32
    %c0_i32_0 = arith.constant 0 : i32
    return %arg1, %c0_i32 : i32, i32
  }
  func.func @transform_3(%arg0: i32, %arg1: i32) -> (i32, i32) {
    %c0_i32 = arith.constant 0 : i32
    %c0_i32_0 = arith.constant 0 : i32
    %c0_i32_1 = arith.constant 0 : i32
    return %c0_i32, %c0_i32_0 : i32, i32
  }
  func.func @transform_4(%arg0: i32, %arg1: i32) -> (i32, i32) {
    %c0_i32 = arith.constant 0 : i32
    %c0_i32_0 = arith.constant 0 : i32
    %c0_i32_1 = arith.constant 0 : i32
    return %c0_i32, %c0_i32_0 : i32, i32
  }
  func.func @transform_5(%arg0: i32, %arg1: i32) -> (i32, i32) {
    %c0_i32 = arith.constant 0 : i32
    %c0_i32_0 = arith.constant 0 : i32
    return %arg0, %c0_i32 : i32, i32
  }
}

</mosaic_0001>

<bundles_post_ra>
// kernel: tpu_custom_call.1
= control target key start
LH: loop header
LB: loop body
LE: loop exit
PB: predicated region body
PF: predicated region fallthrough
CT: control target
= control target key end

     0   :  { %s1718_s0 = inlined_call_operand.hbm [shape: f32[48,128], index: 0, kind: input, shape index: {}]   ;;  %s1719_s1 = inlined_call_operand.hbm [shape: f32[128,512], index: 1, kind: input, shape index: {}]   ;;  %s1720_s2 = inlined_call_operand.hbm [shape: f32[512,128], index: 2, kind: input, shape index: {}]   ;;  %s1721_s3 = inlined_call_operand.vmem [shape: f32[1,128], index: 3, kind: input, shape index: {}]   ;;  %s1722_s4 = inlined_call_operand.vmem [shape: f32[1,128], index: 4, kind: input, shape index: {}]   ;;  %s1723_s5 = inlined_call_operand.hbm [shape: f32[48,128], index: 5, kind: output, shape index: {}]  }
   0x1   :  { %1740 = sst [smem:[#allocation21_spill]] %s1719_s1 }
   0x2   :  { %1741 = sst [smem:[#allocation22_spill]] %s1722_s4 }
   0x3   :  { %1742 = sst [smem:[#allocation23_spill]] %s1723_s5 }
   0x4   :  { %10 = vsyncpa [#allocation4], 0 }
   0x5   :  { %12 = vsyncpa [#allocation4 + $0x1], 0 }
   0x6   :  { %13 = vsyncpa [#allocation7], 0 }
   0x7   :  { %15 = vsyncpa [#allocation7 + $0x1], 0 }
   0x8   :  { %16 = vsyncpa [#allocation5], 0 }
   0x9   :  { %18 = vsyncpa [#allocation5 + $0x1], 0  ;;  %s1305_s18 = smov 0   ;;  %s1307_s19 = smov 0  }
   0xa   :  { %s1309_s20 = smov 0   ;;  %s1311_s21 = smov 0  }
   0xb   :  { %s1313_s22 = smov 0   ;;  %s1315_s23 = smov 0  }
   0xc   :  { %s1317_s24 = smov 0   ;;  %s1319_s25 = smov 0  }
   0xd   :  { %s1321_s26 = smov 0   ;;  %s1323_s27 = smov 0  }
   0xe   :  { %s1325_s28 = smov 0  }
   0xf LB: > { %1743 = sst [smem:[#allocation13_spill]] %s1231_s20  ;;  %s33_s29 = sadd.s32 1, %s1255_s26  ;;  %s1263_s28 = sphi %s1325_s28, %s24_s28   ;;  %s1259_s27 = sphi %s1323_s27, %s1783_s27   ;;  %s1255_s26 = sphi %s1321_s26, %s1789_s26   ;;  %s1251_s25 = sphi %s1319_s25, %s1781_s25   ;;  %s1247_s24 = sphi %s1317_s24, %s1788_s24   ;;  %s1243_s23 = sphi %s1315_s23, %s1780_s23   ;;  %s1239_s22 = sphi %s1313_s22, %s1787_s22   ;;  %s1235_s21 = sphi %s1311_s21, %s1786_s21   ;;  %s1231_s20 = sphi %s1309_s20, %s1778_s20   ;;  %s1227_s19 = sphi %s1307_s19, %s1785_s19   ;;  %s1223_s18 = sphi %s1305_s18, %s1784_s18  }
  0x10   : > { %1744 = sst [smem:[#allocation14_spill]] %s1243_s23  ;;  %p1726_p0 = scmp.eq.s32.totalorder %s1263_s28, 0 }
  0x11   : > { %1745 = sst [smem:[#allocation15_spill]] %s1251_s25  ;;  %p1362_p1 = scmp.ge.s32.totalorder %s33_s29, 4 }
  0x12   : > { %1746 = sst [smem:[#allocation16_spill]] %s1259_s27  ;;  %s69_s6 = sadd.s32 1, %s1231_s20 }
  0x13   : > { %p76_p2 = scmp.ne.s32.totalorder %s1231_s20, %s1227_s19  ;;  %s1791_s29 = smov (%p1362_p1, %s33_s29), 0 }
  0x14   : > { %1748 = sst [smem:[#allocation17_spill]] %s1791_s29  ;;  %s66_s7 = ssub.s32 %s1255_s26, %s1791_s29 }
  0x15   : > { %p78_p4 = por %p76_p2, %p1726_p0  ;;  %p1725_p5 = scmp.lt.s32.totalorder %s1263_s28, 12 }
  0x16   : > { %p67_p6 = scmp.eq.s32.totalorder %s66_s7, 0  ;;  %s227_s8 = sand.u32 1, %s1263_s28  }
  0x17   : > { %s229_s10 = sand.u32 1, %s1231_s20   ;;  %s734_s12 = sshll.u32 %s1255_s26, 7 }
  0x18   : > { %s1382_s9 = scalar_select %p67_p6, %s1231_s20, %s69_s6  }
  0x19   : > { %s1385_s11 = sshll.u32 %s229_s10, 7  ;;  %s1750_s1 = sld [smem:[#allocation21_spill]] }
  0x1a   : > { %1749 = sst [smem:[#allocation18_spill]] %s1382_s9  ;;  %s231_s16 = scalar_lea.vmem [#allocation6], %s1385_s11 }
  0x1b   : > { %s237_s17 = sshll.u32 %s231_s16, 4  ;;  %p1396_p7 = pnand %p1725_p5, %p78_p4  ;;  %s1400_s17 = int_to_ptr.vmem [resolvable:$true] %s237_s17 }
  0x1c   : > { %s1403_s7 = scalar_lea.sflag [#allocation7], %s227_s8 }
  0x1d   : > { %p1729_p10 = pneg %p1396_p7 }
  0x1f   : > { %s1391_s15 = scalar_lea.hbm %s1750_s1, %s734_s12  ;;  %s1052_s14 = scalar_lea.hbm %s1750_s1, 8192 }
  0x20   : > { %s1047_s10 = scalar_lea.hbm %s1391_s15, 2048  ;;  %p1053_p13 = scmp.lt.u32.totalorder %s1391_s15, %s1750_s1 }
  0x21   : > { %p1048_p9 = scmp.ne.s32.totalorder %s1391_s15, %s1047_s10  ;;  %p1054_p2 = scmp.lt.u32.totalorder %s1052_s14, %s1047_s10 }
  0x22   : > { %p1056_p6 = scmp.lt.u32.totalorder %s1047_s10, %s1391_s15 }
  0x23   : > { %p1050_p11 = pnand %p1729_p10, %p1048_p9  ;;  %p1055_p4 = por %p1054_p2, %p1053_p13 }
  0x25   : > { %p1051_p12 = pneg %p1050_p11  ;;  %p1057_p5 = por %p1056_p6, %p1055_p4 }
  0x27   : > { %p1058_p3 = pnand %p1057_p5, %p1051_p12 }
  0x29   : > { %1061 = shalt.err (!%p1058_p3)
}
  0x2a   : > { %s1062_s8 = scalar_lea.vmem %s1400_s17, 2048  ;;  %s1265_s12 = smov [#allocation6]  }
  0x2b   : > { %p1063_p9 = scmp.ne.s32.totalorder %s1400_s17, %s1062_s8  ;;  %s1067_s13 = sshll.u32 %s1265_s12, 4  ;;  %s1068_s13 = int_to_ptr.vmem [resolvable:$false] %s1067_s13 }
  0x2c   : > { %s1069_s29 = scalar_lea.vmem %s1068_s13, 4096  ;;  %p1070_p8 = scmp.lt.s32.totalorder %s1400_s17, %s1068_s13 }
  0x2d   : > { %p1065_p11 = pnand %p1063_p9, %p1729_p10  ;;  %p1071_p13 = scmp.lt.s32.totalorder %s1069_s29, %s1062_s8 }
  0x2f   : > { %p1066_p0 = pneg %p1065_p11  ;;  %p1072_p2 = por %p1071_p13, %p1070_p8 }
  0x31   : > { %p1073_p4 = pnand %p1072_p2, %p1066_p0 }
  0x33   : > { %1076 = shalt.err (!%p1073_p4)
}
  0x34   : > { %s1266_s10 = smov 512   ;;  %s1727_s14 = smov 128  }
  0x35   : > { %s1730_s16 = smov 8   ;;  %p266_p0 = scmp.lt.s32.totalorder %s1263_s28, 13 }
  0x36   : > { %939 = dma.hbm_to_vmem [thread:$0]  (!%p1396_p7), %s1391_s15, 2048, %s1400_s17, %s1403_s7, %s1266_s10, %s1727_s14, %s1730_s16  }
  0x37   : > { %p1752_p3 = scmp.ge.s32.totalorder %s1263_s28, 1  ;;  %s1441_s12 = sadd.s32 4294967295, %s1263_s28  }
  0x38   : > { %s727_s13 = sadd.s32 4294967294, %s1263_s28   ;;  %s36_s29 = sadd.s32 1, %s1259_s27 }
  0x39   : > { %p1436_p5 = pnand %p1752_p3, %p266_p0  ;;  %s43_s1 = sadd.s32 1, %s1243_s23 }
  0x3a   : > { %s1793_s29 = smov (!%p1362_p1, %s36_s29), %s1259_s27  ;;  %p50_p8 = scmp.ne.s32.totalorder %s1243_s23, %s1239_s22 }
  0x3b   : > { %s1753_s8 = scalar_select %p1436_p5, 1, 0 }
  0x3c   : > { %p56_p12 = scmp.ne.s32.totalorder %s1239_s22, %s1235_s21  ;;  %p38_p6 = scmp.ge.s32.totalorder %s1793_s29, 3 }
  0x3d   : > { %p57_p9 = scmp.eq.s32.totalorder %s1441_s12, 0  ;;  %p1754_p11 = scmp.eq.s32.totalorder %s1263_s28, 0 }
  0x3e   : > { %p174_p2 = scmp.eq.s32.totalorder %s1441_s12, 11  ;;  %s1795_s29 = smov (%p38_p6, %s1793_s29), 0 }
  0x3f   : > { %p1456_p13 = por %p1754_p11, %p50_p8  ;;  %1756 = sst [smem:[#allocation19_spill]] %s1795_s29 }
  0x40   : > { %p1466_p1 = por %p57_p9, %p56_p12  ;;  %p1758_p4 = scmp.ne.s32.totalorder %s1227_s19, %s1223_s18 }
  0x41   : > { %s40_s10 = ssub.s32 %s1259_s27, %s1795_s29  ;;  %p1479_p3 = por %p174_p2, %p50_p8 }
  0x42   : > { %s1757_s30 = scalar_select %p1466_p1, 1, 0 }
  0x43   : > { %p1473_p0 = por %p1758_p4, %p57_p9  ;;  %p41_p11 = scmp.eq.s32.totalorder %s40_s10, 0 }
  0x44   : > { %s1760_s14 = scalar_select %p1479_p3, 1, 0 }
  0x45   : > { %s1759_s17 = scalar_select %p1473_p0, 1, 0 }
  0x46   : > { %p180_p10 = scmp.eq.s32.totalorder %s727_s13, 11  ;;  %s206_s16 = sand.u32 1, %s1243_s23  }
  0x47   : > { %s752_s9 = sshll.u32 %s1259_s27, 8  ;;  %s730_s18 = sshll.u32 %s206_s16, 4 }
  0x48   : > { %s1486_s20 = scalar_select %p41_p11, %s1243_s23, %s43_s1  }
  0x49   : > { %p1491_p6 = por %p180_p10, %p56_p12  ;;  %s1498_s29 = scalar_lea.hbm %s1718_s0, %s752_s9 }
  0x4a   : > { %1761 = sst [smem:[#allocation20_spill]] %s1486_s20  ;;  %p1763_p8 = scmp.lt.s32.totalorder %s1263_s28, 12 }
  0x4b   : > { %s1762_s5 = scalar_select %p1491_p6, 1, 0 }
  0x4c   : > { %p1504_p9 = pnand %p1763_p8, %p1456_p13  ;;  %s210_s13 = scalar_lea.vmem [#allocation3], %s730_s18 }
  0x4d   : > { %s217_s10 = sshll.u32 %s210_s13, 4  ;;  %s1510_s27 = scalar_lea.sflag [#allocation4], %s206_s16  ;;  %s1508_s10 = int_to_ptr.vmem [resolvable:$true] %s217_s10 }
  0x4e   : > { %s1077_s4 = scalar_lea.hbm %s1498_s29, 256  ;;  %p1079_p12 = pneg %p1504_p9 }
  0x4f   : > { %p1078_p10 = scmp.ne.s32.totalorder %s1498_s29, %s1077_s4  ;;  %s1082_s15 = scalar_lea.hbm %s1718_s0, 768 }
  0x50   : > { %p1083_p13 = scmp.lt.u32.totalorder %s1498_s29, %s1718_s0  ;;  %p1084_p11 = scmp.lt.u32.totalorder %s1082_s15, %s1077_s4 }
  0x51   : > { %p1080_p2 = pnand %p1079_p12, %p1078_p10  ;;  %p1086_p6 = scmp.lt.u32.totalorder %s1077_s4, %s1498_s29 }
  0x52   : > { %p1085_p8 = por %p1084_p11, %p1083_p13 }
  0x53   : > { %p1081_p4 = pneg %p1080_p2 }
  0x54   : > { %p1087_p3 = por %p1086_p6, %p1085_p8 }
  0x56   : > { %p1088_p0 = pnand %p1087_p3, %p1081_p4 }
  0x58   : > { %1091 = shalt.err (!%p1088_p0)
}
  0x59   : > { %s1092_s16 = scalar_lea.vmem %s1508_s10, 256  ;;  %s1269_s18 = smov [#allocation3]  }
  0x5a   : > { %p1093_p10 = scmp.ne.s32.totalorder %s1508_s10, %s1092_s16  ;;  %s1097_s13 = sshll.u32 %s1269_s18, 4  ;;  %s1098_s13 = int_to_ptr.vmem [resolvable:$false] %s1097_s13 }
  0x5b   : > { %s1099_s20 = scalar_lea.vmem %s1098_s13, 512  ;;  %p1100_p5 = scmp.lt.s32.totalorder %s1508_s10, %s1098_s13 }
  0x5c   : > { %p1095_p2 = pnand %p1093_p10, %p1079_p12  ;;  %p1101_p13 = scmp.lt.s32.totalorder %s1099_s20, %s1092_s16 }
  0x5e   : > { %p1096_p1 = pneg %p1095_p2  ;;  %p1102_p11 = por %p1101_p13, %p1100_p5 }
  0x60   : > { %p1103_p6 = pnand %p1102_p11, %p1096_p1 }
  0x62   : > { %1106 = shalt.err (!%p1103_p6)
}
  0x63   : > { %s1765_s23 = smov 8   ;;  %s1766_s4 = smov 128  }
  0x64   : > { %936 = dma.hbm_to_vmem [thread:$0]  (!%p1504_p9), %s1498_s29, 256, %s1508_s10, %s1510_s27, %s1766_s4, %s1766_s4, %s1765_s23  }
  0x65   : > { %s753_s25 = sshll.u32 %s1255_s26, 11  ;;  %s251_s9 = scalar_lea.vmem [#allocation8], %s1385_s11 }
  0x66   : > { %s258_s15 = sshll.u32 %s251_s9, 4  ;;  %s1546_s13 = scalar_lea.hbm %s1720_s2, %s753_s25  ;;  %s1548_s15 = int_to_ptr.vmem [resolvable:$true] %s258_s15 }
  0x67   : > { %s1107_s1 = scalar_lea.hbm %s1546_s13, 2048  ;;  %p1767_p1 = pneg %p1396_p7 }
  0x68   : > { %p1108_p5 = scmp.ne.s32.totalorder %s1546_s13, %s1107_s1  ;;  %s1112_s29 = scalar_lea.hbm %s1720_s2, 8192 }
  0x69   : > { %p1113_p9 = scmp.lt.u32.totalorder %s1546_s13, %s1720_s2  ;;  %p1114_p12 = scmp.lt.u32.totalorder %s1112_s29, %s1107_s1 }
  0x6a   : > { %p1110_p0 = pnand %p1108_p5, %p1767_p1  ;;  %p1116_p8 = scmp.lt.u32.totalorder %s1107_s1, %s1546_s13 }
  0x6b   : > { %p1115_p4 = por %p1114_p12, %p1113_p9 }
  0x6c   : > { %p1111_p3 = pneg %p1110_p0 }
  0x6d   : > { %p1117_p10 = por %p1116_p8, %p1115_p4 }
  0x6f   : > { %p1118_p2 = pnand %p1117_p10, %p1111_p3 }
  0x71   : > { %1121 = shalt.err (!%p1118_p2)
}
  0x72   : > { %s1122_s25 = scalar_lea.vmem %s1548_s15, 2048  ;;  %p1768_p11 = pmov %p1767_p1 }
  0x73   : > { %p1123_p13 = scmp.ne.s32.totalorder %s1548_s15, %s1122_s25  ;;  %s1270_s9 = smov [#allocation8]  }
  0x74   : > { %s1127_s18 = sshll.u32 %s1270_s9, 4  ;;  %s1128_s18 = int_to_ptr.vmem [resolvable:$false] %s1127_s18 }
  0x75   : > { %p1125_p6 = pnand %p1123_p13, %p1768_p11  ;;  %s1129_s16 = scalar_lea.vmem %s1128_s18, 4096 }
  0x76   : > { %p1130_p1 = scmp.lt.s32.totalorder %s1548_s15, %s1128_s18  ;;  %p1131_p0 = scmp.lt.s32.totalorder %s1129_s16, %s1122_s25 }
  0x77   : > { %p1126_p5 = pneg %p1125_p6 }
  0x78   : > { %p1132_p9 = por %p1131_p0, %p1130_p1 }
  0x7a   : > { %p1133_p12 = pnand %p1132_p9, %p1126_p5 }
  0x7c   : > { %1136 = shalt.err (!%p1133_p12)
}
  0x7d   : > { %942 = dma.hbm_to_vmem [thread:$0]  (!%p1396_p7), %s1546_s13, 2048, %s1548_s15, %s1403_s7, %s1766_s4, %s1766_s4, %s1765_s23  }
  0x7e   : > { %p1769_p3 = scmp.ne.s32.totalorder %s1753_s8, 0 }
  0x7f   : > { %s1580_s1 = sand.u32 (!%p1769_p3), 1, %s1239_s22   ;;  %p1770_p4 = scmp.ne.s32.totalorder (!%p1769_p3), %s1757_s30, 0 }
  0x80   : > { %270 = sbr.rel (%p1769_p3) target bundleno = 971 (0x3cb), region = 40  ;;  %s739_s27 = sshll.u32 (!%p1769_p3), %s1580_s1, 4 }
  0x81   : > { %s273_s11 = scalar_lea.sflag (!%p1769_p3), [#allocation4], %s1580_s1  ;;  %s1584_s29 = scalar_lea.vmem (!%p1769_p3), [#allocation3], %s739_s27 }
  0x87   : > { %1210 = dma.done.wait (%p1770_p4), %s273_s11, 256  }
  0x88   : > { %1212 = vsyncadd (%p1770_p4), %s273_s11, 4294967040  ;;  %s281_s6 = sand.u32 1, %s1441_s12   ;;  %s283_s7 = sand.u32 1, %s1227_s19  }
  0x89   : > { %s740_s8 = sshll.u32 %s283_s7, 7  ;;  %s282_s23 = scalar_lea.sflag [#allocation7], %s281_s6 }
  0x8a   : > { %s1592_s4 = scalar_lea.vmem [#allocation6], %s740_s8  ;;  %p1771_p7 = scmp.ne.s32.totalorder %s1759_s17, 0 }
  0x8c   : > { %1214 = dma.done.wait (%p1771_p7), %s282_s23, 4096  }
  0x8d   : > { %1216 = vsyncadd (%p1771_p7), %s282_s23, 4294963200  ;;  %s1598_s15 = scalar_lea.vmem [#allocation8], %s740_s8  ;;  %s1600_s13 = scalar_lea.vmem [#allocation9], %s739_s27 }
  0x8e   : > { %p743_p8 = scmp.ne.s32.totalorder %s1247_s24, 0 }
  0x8f   : > { %v1271_v0 = vmov (!%p743_p8), 0.0  }
  0x90   : > { %337 = sbr.rel (%p743_p8) target bundleno = 151 (0x97), region = 56  ;;  %338 = vst [vmem:[#allocation2] sm:$0xff] (!%p743_p8), %v1271_v0  ;;  %339 = vst [vmem:[#allocation2 + $0x8] sm:$0xff] (!%p743_p8), %v1271_v0 }
  0x97 PF: > { %v342_v1 = vld [vmem:[%s1592_s4] sm:$0xff]  ;;  %v343_v2 = vld [vmem:[%s1592_s4 + $0x8] sm:$0xff]  ;;  %v344_v3 = vld [vmem:[%s1592_s4 + $0x10] sm:$0xff]  ;;  %p744_p10 = scmp.ne.s32.totalorder %s1247_s24, 3 }
  0x98   : > { %v861_v4 = vpack.c.bf16 %v343_v2, %v342_v1  ;;  %v345_v5 = vld [vmem:[%s1592_s4 + $0x18] sm:$0xff]  ;;  %v346_v7 = vld [vmem:[%s1592_s4 + $0x20] sm:$0xff]  ;;  %v347_v8 = vld [vmem:[%s1592_s4 + $0x28] sm:$0xff]  ;;  %s1772_s10 = sld [smem:[#allocation22_spill]] (!%p744_p10) }
  0x99   : > { %v865_v6 = vpack.c.bf16 %v345_v5, %v344_v3  ;;  %v869_v9 = vpack.c.bf16 %v347_v8, %v346_v7  ;;  %v348_v10 = vld [vmem:[%s1592_s4 + $0x30] sm:$0xff]  ;;  %v349_v11 = vld [vmem:[%s1592_s4 + $0x38] sm:$0xff]  ;;  %v437_v13 = vld [vmem:[%s1598_s15] sm:$0xff] }
  0x9a   : > { %862 = vmatprep.subr.bf16.mxu0 %v861_v4  ;;  %v340_v12 = vld [vmem:[%s1584_s29] sm:$0xff]  ;;  %v438_v14 = vld [vmem:[%s1598_s15 + $0x8] sm:$0xff]  ;;  %v440_v17 = vld [vmem:[%s1598_s15 + $0x18] sm:$0xff]  ;;  %v873_v21 = vpack.c.bf16 %v349_v11, %v348_v10 }
  0x9b   : > { %864 = vmatpush3.bf16.msra.mxu0 %v861_v4  ;;  %823 = vmatprep.mubr.f32.mxu0 %v340_v12  ;;  %v439_v15 = vld [vmem:[%s1598_s15 + $0x10] sm:$0xff]  ;;  %v893_v16 = vpack.c.bf16 %v438_v14, %v437_v13  ;;  %v441_v19 = vld [vmem:[%s1598_s15 + $0x20] sm:$0xff]  ;;  %v442_v20 = vld [vmem:[%s1598_s15 + $0x28] sm:$0xff] }
  0x9c   : > { %866 = vmatprep.subr.bf16.mxu0 %v865_v6  ;;  %v897_v18 = vpack.c.bf16 %v440_v17, %v439_v15  ;;  %v350_v22 = vld [vmem:[%s1592_s4 + $0x40] sm:$0xff]  ;;  %v351_v23 = vld [vmem:[%s1592_s4 + $0x48] sm:$0xff]  ;;  %v901_v24 = vpack.c.bf16 %v442_v20, %v441_v19  ;;  %v443_v25 = vld [vmem:[%s1598_s15 + $0x30] sm:$0xff] }
  0x9d   : > { %894 = vmatprep.subr.bf16.mxu1 %v893_v16  ;;  %v444_v26 = vld [vmem:[%s1598_s15 + $0x38] sm:$0xff]  ;;  %v877_v27 = vpack.c.bf16 %v351_v23, %v350_v22  ;;  %v352_v28 = vld [vmem:[%s1592_s4 + $0x50] sm:$0xff]  ;;  %v445_v31 = vld [vmem:[%s1598_s15 + $0x40] sm:$0xff] }
  0x9e   : > { %896 = vmatpush3.bf16.msra.mxu1 %v893_v16  ;;  %v353_v29 = vld [vmem:[%s1592_s4 + $0x58] sm:$0xff]  ;;  %v905_v30 = vpack.c.bf16 %v444_v26, %v443_v25  ;;  %v446_v32 = vld [vmem:[%s1598_s15 + $0x48] sm:$0xff]  ;;  %v354_v34 = vld [vmem:[%s1592_s4 + $0x60] sm:$0xff] }
  0x9f   : > { %868 = vmatpush3.bf16.msra.mxu0 %v865_v6  ;;  %898 = vmatprep.subr.bf16.mxu1 %v897_v18  ;;  %v881_v33 = vpack.c.bf16 %v353_v29, %v352_v28  ;;  %v355_v35 = vld [vmem:[%s1592_s4 + $0x68] sm:$0xff]  ;;  %v909_v36 = vpack.c.bf16 %v446_v32, %v445_v31  ;;  %v447_v37 = vld [vmem:[%s1598_s15 + $0x50] sm:$0xff]  ;;  %v448_v38 = vld [vmem:[%s1598_s15 + $0x58] sm:$0xff] }
  0xa0   : > { %870 = vmatprep.subr.bf16.mxu0 %v869_v9  ;;  %v885_v39 = vpack.c.bf16 %v355_v35, %v354_v34  ;;  %v356_v40 = vld [vmem:[%s1592_s4 + $0x70] sm:$0xff]  ;;  %v357_v41 = vld [vmem:[%s1592_s4 + $0x78] sm:$0xff]  ;;  %v913_v42 = vpack.c.bf16 %v448_v38, %v447_v37  ;;  %v449_v43 = vld [vmem:[%s1598_s15 + $0x60] sm:$0xff] }
  0xa1   : > { %v450_v44 = vld [vmem:[%s1598_s15 + $0x68] sm:$0xff]  ;;  %v889_v45 = vpack.c.bf16 %v357_v41, %v356_v40  ;;  %v451_v48 = vld [vmem:[%s1598_s15 + $0x70] sm:$0xff]  ;;  %v452_v49 = vld [vmem:[%s1598_s15 + $0x78] sm:$0xff] }
  0xa2   : > { %900 = vmatpush3.bf16.msra.mxu1 %v897_v18  ;;  %v917_v46 = vpack.c.bf16 %v450_v44, %v449_v43  ;;  %v341_v47 = vld [vmem:[%s1584_s29 + $0x8] sm:$0xff]  ;;  %v921_v50 = vpack.c.bf16 %v452_v49, %v451_v48  ;;  %v435_v56 = vld [vmem:[#allocation2] sm:$0xff] }
  0xa3   : > { %872 = vmatpush3.bf16.msra.mxu0 %v869_v9  ;;  %902 = vmatprep.subr.bf16.mxu1 %v901_v24  ;;  %v436_v55 = vld [vmem:[#allocation2 + $0x8] sm:$0xff]  ;;  %v538_v62 = vld [vmem:[%s1584_s29] sm:$0xff] (!%p744_p10) }
  0xa4   : > { %874 = vmatprep.subr.bf16.mxu0 %v873_v21  ;;  %v539_v1 = vld [vmem:[%s1584_s29 + $0x8] sm:$0xff] (!%p744_p10)  ;;  %v745_v18 = vld [vmem:[%s1721_s3] ss:$0 sm:$0xff] (!%p744_p10) }
  0xa5   : > { %v746_v20 = vld [vmem:[%s1772_s10] ss:$0 sm:$0xff] (!%p744_p10) }
  0xa6   : > { %904 = vmatpush3.bf16.msra.mxu1 %v901_v24 }
  0xa7   : > { %876 = vmatpush3.bf16.msra.mxu0 %v873_v21  ;;  %906 = vmatprep.subr.bf16.mxu1 %v905_v30 }
  0xa8   : > { %878 = vmatprep.subr.bf16.mxu0 %v877_v27 }
  0xaa   : > { %908 = vmatpush3.bf16.msra.mxu1 %v905_v30 }
  0xab   : > { %880 = vmatpush3.bf16.msra.mxu0 %v877_v27  ;;  %910 = vmatprep.subr.bf16.mxu1 %v909_v36 }
  0xac   : > { %882 = vmatprep.subr.bf16.mxu0 %v881_v33 }
  0xae   : > { %912 = vmatpush3.bf16.msra.mxu1 %v909_v36 }
  0xaf   : > { %884 = vmatpush3.bf16.msra.mxu0 %v881_v33  ;;  %914 = vmatprep.subr.bf16.mxu1 %v913_v42 }
  0xb0   : > { %886 = vmatprep.subr.bf16.mxu0 %v885_v39 }
  0xb2   : > { %916 = vmatpush3.bf16.msra.mxu1 %v913_v42 }
  0xb3   : > { %888 = vmatpush3.bf16.msra.mxu0 %v885_v39  ;;  %918 = vmatprep.subr.bf16.mxu1 %v917_v46 }
  0xb4   : > { %890 = vmatprep.subr.bf16.mxu0 %v889_v45 }
  0xb6   : > { %920 = vmatpush3.bf16.msra.mxu1 %v917_v46 }
  0xb7   : > { %892 = vmatpush3.bf16.msra.mxu0 %v889_v45  ;;  %922 = vmatprep.subr.bf16.mxu1 %v921_v50 }
  0xba   : > { %824 = vmatmul.mubr.f32.vlgmr.msra.gmra.mrb[0].mxu0 %v341_v47  ;;  %924 = vmatpush3.bf16.msra.mxu1 %v921_v50 }
 0x18d   : > { %v825_v51 = vpop.f32.mrb[0].mxu0 }
 0x18e   : > { %v424_v52 = vpop.f32.mrb[1].mxu0  ;;  %v434_v54 = vmax.f32 %v825_v51, 0.0 }
 0x18f   : > { %v433_v53 = vmax.f32 %v424_v52, 0.0 }
 0x191   : > { %858 = vmatprep.mubr.f32.mxu1 %v433_v53 }
 0x192   : > { %859 = vmatmul.mubr.f32.vlgmr.msra.gmra.mrb[0].mxu1 %v434_v54 }
 0x263   : > { %535 = sbr.rel (%p744_p10) target bundleno = 943 (0x3af), region = 60 }
 0x265   : > { %v860_v57 = vpop.f32.mrb[0].mxu1 }
 0x266   : > { %v529_v58 = vadd.f32 %v860_v57, %v436_v55  ;;  %v519_v59 = vpop.f32.mrb[1].mxu1 }
 0x267   : > { %v528_v60 = vadd.f32 %v519_v59, %v435_v56 }
 0x268   : > { %531 = vst [vmem:[#allocation2 + $0x8] sm:$0xff] %v529_v58 }
 0x269   : > { %530 = vst [vmem:[#allocation2] sm:$0xff] %v528_v60 }
 0x26f   : > { %v537_v63 = vld [vmem:[#allocation2 + $0x8] sm:$0xff] }
 0x270   : > { %v536_v61 = vld [vmem:[#allocation2] sm:$0xff]  ;;  %v541_v2 = vadd.f32 %v539_v1, %v537_v63 }
 0x271   : > { %v540_v0 = vadd.f32 %v538_v62, %v536_v61 }
 0x273   : > { %542 = vadd.xlane.f32.xlu0 %v540_v0 }
 0x277   : > { %544 = vadd.xlane.f32.xlu0 %v541_v2 }
 0x300   : > { %v543_v3 = vpop.xlane.xlu0 %542 }
 0x301   : > { %v547_v4 = vmul.f32 0.0078125, %v543_v3 }
 0x303   : > { %v549_v5 = vsub.f32 %v540_v0, %v547_v4 }
 0x304   : > { %v545_v6 = vpop.xlane.xlu0 %544 }
 0x305   : > { %v548_v7 = vmul.f32 0.0078125, %v545_v6  ;;  %v551_v8 = vmul.f32 %v549_v5, %v549_v5 }
 0x307   : > { %v550_v9 = vsub.f32 %v541_v2, %v548_v7  ;;  %553 = vadd.xlane.f32.xlu1 %v551_v8 }
 0x309   : > { %v552_v10 = vmul.f32 %v550_v9, %v550_v9 }
 0x30b   : > { %555 = vadd.xlane.f32.xlu1 %v552_v10 }
 0x394   : > { %v554_v11 = vpop.xlane.xlu1 %553 }
 0x395   : > { %v557_v12 = vmul.f32 0.0078125, %v554_v11 }
 0x397   : > { %v559_v13 = vadd.f32 1e-05, %v557_v12 }
 0x398   : > { %v556_v14 = vpop.xlane.xlu1 %555 }
 0x399   : > { %1043 = vrsqrt.f32 %v559_v13  ;;  %v558_v15 = vmul.f32 0.0078125, %v556_v14 }
 0x39b   : > { %v560_v16 = vadd.f32 1e-05, %v558_v15 }
 0x39d   : > { %1045 = vrsqrt.f32 %v560_v16 }
 0x3a3   : > { %v1044_v17 = vpop.eup %1043 }
 0x3a4   : > { %v563_v19 = vmul.f32 %v1044_v17, %v549_v5 }
 0x3a6   : > { %v572_v21 = vmul.f32 %v745_v18, %v563_v19 }
 0x3a7   : > { %v1046_v22 = vpop.eup %1045 }
 0x3a8   : > { %v581_v23 = vadd.f32 %v746_v20, %v572_v21  ;;  %v564_v24 = vmul.f32 %v1046_v22, %v550_v9 }
 0x3aa   : > { %583 = vst [vmem:[%s1600_s13] sm:$0xff] %v581_v23  ;;  %v573_v25 = vmul.f32 %v745_v18, %v564_v24 }
 0x3ac   : > { %v582_v26 = vadd.f32 %v746_v20, %v573_v25 }
 0x3ae   : > { %584 = vst [vmem:[%s1600_s13 + $0x8] sm:$0xff] %v582_v26 }
 0x3af PF: > { %s1773_s20 = sld [smem:[#allocation15_spill]]  ;;  %s599_s11 = sshll.u32 %s1600_s13, 4  ;;  %s1655_s11 = int_to_ptr.vmem [resolvable:$true] %s599_s11 }
 0x3b0   : > { %s1774_s16 = sld [smem:[#allocation23_spill]]  ;;  %s586_s29 = scalar_lea.sflag [#allocation5], %s1580_s1 }
 0x3b1   : > { %s1137_s6 = scalar_lea.vmem %s1655_s11, 256  ;;  %p1775_p13 = scmp.ne.s32.totalorder %s1760_s14, 0 }
 0x3b2   : > { %p1138_p2 = scmp.ne.s32.totalorder %s1655_s11, %s1137_s6  ;;  %s1272_s7 = smov [#allocation9]  }
 0x3b3   : > { %s1141_s8 = sshll.u32 %s1272_s7, 4  ;;  %s1142_s8 = int_to_ptr.vmem [resolvable:$false] %s1141_s8 }
 0x3b4   : > { %p1139_p11 = pnand %p1138_p2, %p1775_p13  ;;  %s1143_s23 = scalar_lea.vmem %s1142_s8, 512 }
 0x3b5   : > { %s754_s25 = sshll.u32 %s1773_s20, 8  ;;  %p1144_p5 = scmp.lt.s32.totalorder %s1655_s11, %s1142_s8 }
 0x3b6   : > { %s1652_s27 = scalar_lea.hbm %s1774_s16, %s754_s25  ;;  %p1140_p6 = pneg %p1139_p11 }
 0x3b7   : > { %p1145_p1 = scmp.lt.s32.totalorder %s1143_s23, %s1137_s6 }
 0x3b9   : > { %p1146_p0 = por %p1145_p1, %p1144_p5 }
 0x3bb   : > { %p1147_p9 = pnand %p1146_p0, %p1140_p6 }
 0x3bd   : > { %1150 = shalt.err (!%p1147_p9)
}
 0x3be   : > { %s1151_s4 = scalar_lea.hbm %s1652_s27, 256  ;;  %s1155_s24 = scalar_lea.hbm %s1774_s16, 768 }
 0x3bf   : > { %p1152_p12 = scmp.ne.s32.totalorder %s1652_s27, %s1151_s4  ;;  %p1156_p7 = scmp.lt.u32.totalorder %s1652_s27, %s1774_s16 }
 0x3c0   : > { %p1157_p8 = scmp.lt.u32.totalorder %s1155_s24, %s1151_s4  ;;  %p1159_p2 = scmp.lt.u32.totalorder %s1151_s4, %s1652_s27 }
 0x3c1   : > { %p1153_p3 = pnand %p1152_p12, %p1775_p13 }
 0x3c2   : > { %p1158_p10 = por %p1157_p8, %p1156_p7 }
 0x3c3   : > { %p1154_p4 = pneg %p1153_p3 }
 0x3c4   : > { %p1160_p11 = por %p1159_p2, %p1158_p10 }
 0x3c6   : > { %p1161_p6 = pnand %p1160_p11, %p1154_p4 }
 0x3c8   : > { %1164 = shalt.err (!%p1161_p6)
}
 0x3c9   : > { %s1273_s17 = smov 128   ;;  %s1274_s10 = smov 8  }
 0x3ca   : > { %931 = dma.vmem_to_hbm [thread:$0]  (%p1775_p13), %s1655_s11, 256, %s1652_s27, %s586_s29, %s1273_s17, %s1273_s17, %s1274_s10  }
 0x3cb PF: > { %p948_p5 = scmp.ge.s32.totalorder %s1263_s28, 2  ;;  %s614_s20 = sand.u32 1, %s1235_s21  }
 0x3cc   : > { %p1776_p1 = scmp.ne.s32.totalorder %s1762_s5, 0  ;;  %s615_s25 = scalar_lea.sflag [#allocation5], %s614_s20 }
 0x3ce   : > { %p944_p0 = pnand %p948_p5, %p1776_p1 }
 0x3d0   : > { %1218 = dma.done.wait (!%p944_p0), %s615_s25, 256  }
 0x3d1   : > { %1220 = vsyncadd (!%p944_p0), %s615_s25, 4294967040  ;;  %s24_s28 = sadd.s32 1, %s1263_s28   ;;  %s1777_s9 = sld [smem:[#allocation13_spill]] }
 0x3d2   : > { %p21_p9 = scmp.ge.s32.totalorder %s24_s28, 14   ;;  %s1778_s20 = sld [smem:[#allocation18_spill]] }
 0x3d3   : > { %s1779_s14 = sld [smem:[#allocation14_spill]]  ;;  %s1780_s23 = sld [smem:[#allocation20_spill]] }
 0x3d4   : > { %s1781_s25 = sld [smem:[#allocation16_spill]]  ;;  %s1782_s1 = sld [smem:[#allocation17_spill]] }
 0x3d5   : > { %s1783_s27 = sld [smem:[#allocation19_spill]]  ;;  %s1784_s18 = smov %s1227_s19 }
 0x3d6   : > { %s1786_s21 = smov %s1239_s22  ;;  %s1788_s24 = smov %s1255_s26 }
 0x3d7   : > { %s1785_s19 = smov %s1777_s9  ;;  %23 = sbr.rel (!%p21_p9) target bundleno = 15 (0xf), region = 117 }
 0x3d9   : > { %s1787_s22 = smov %s1779_s14 }
 0x3da   : > { %s1789_s26 = smov %s1782_s1 }
 0x3de   :  { %620 = vsyncpa [#allocation4], 1 }
 0x3df   :  { %622 = vsyncpa [#allocation4 + $0x1], 1 }
 0x3e0   :  { %623 = vsyncpa [#allocation7], 1 }
 0x3e1   :  { %625 = vsyncpa [#allocation7 + $0x1], 1 }
 0x3e2   :  { %626 = vsyncpa [#allocation5], 1 }
 0x3e3   :  { %628 = vsyncpa [#allocation5 + $0x1], 1 }

</bundles_post_ra>
